<compile_context>
chip_gen: v5e
topology: v5e:2x2
jax: 0.10.0
libtpu: 0.0.40
codegen_flags: <defaults>
</compile_context>

<pallas_src>
import functools

import jax
import jax.numpy as jnp
from jax import lax
from jax.experimental import pallas as pl
from jax.experimental.pallas import tpu as pltpu


# ----------------------------- kernel helpers -------------------------------

def _layernorm(x, gamma, beta, eps=1e-5):
    # x: (N, D), gamma/beta: (1, D) — matches torch.nn.LayerNorm(dim).
    mean = jnp.mean(x, axis=-1, keepdims=True)
    var = jnp.mean((x - mean) ** 2, axis=-1, keepdims=True)
    return (x - mean) * lax.rsqrt(var + eps) * gamma + beta


# --------------------------- fused layer kernel ------------------------------
# grid = (B, N // tn, heads); head axis is innermost ("arbitrary") and
# accumulates per-head output-projection contributions into acc_sc.

def layer_kernel(x_ref, ln1g_ref, ln1b_ref,
                 wq_ref, wk_ref, wv_ref, wo_ref, bo_ref,
                 ln2g_ref, ln2b_ref, w1_ref, fb1_ref, w2_ref, fb2_ref,
                 o_ref, xn_sc, acc_sc, *, tn):
    t = pl.program_id(1)
    h = pl.program_id(2)
    nh = pl.num_programs(2)
    row0 = pl.multiple_of(t * tn, tn)

    # ---- once per (batch, query-tile): LayerNorm + accumulator init ----
    @pl.when(h == 0)
    def _init():
        x = x_ref[0]                                            # (N, D) f32
        xn = _layernorm(x, ln1g_ref[...], ln1b_ref[...])
        xn_sc[...] = xn.astype(jnp.bfloat16)
        # residual + output-projection bias seeded into the accumulator
        acc_sc[...] = x_ref[0, pl.ds(row0, tn), :] + bo_ref[...]

    xn_q = xn_sc[pl.ds(row0, tn), :]                            # (tn, D) bf16
    xn_kv = xn_sc[...]                                          # (N, D)  bf16

    # ---- per-head attention (scale already folded into W_q) ----
    q = jnp.dot(xn_q, wq_ref[0], preferred_element_type=jnp.float32)    # (tn, dh)
    k = jnp.dot(xn_kv, wk_ref[0], preferred_element_type=jnp.float32)   # (N, dh)
    v = jnp.dot(xn_kv, wv_ref[0], preferred_element_type=jnp.float32)   # (N, dh)

    q_b = q.astype(jnp.bfloat16)
    k_b = k.astype(jnp.bfloat16)
    v_b = v.astype(jnp.bfloat16)

    # (tn, dh) x (N, dh) -> (tn, N), contracting the last dims (no transpose op)
    dots = lax.dot_general(q_b, k_b, (((1,), (1,)), ((), ())),
                           preferred_element_type=jnp.float32)
    e = jnp.exp(dots - jnp.max(dots, axis=-1, keepdims=True))
    attn = e * pl.reciprocal(jnp.sum(e, axis=-1, keepdims=True), approx=True)

    out_h = jnp.dot(attn.astype(jnp.bfloat16), v_b,
                    preferred_element_type=jnp.float32)                 # (tn, dh)
    acc_sc[...] += jnp.dot(out_h.astype(jnp.bfloat16), wo_ref[0],
                           preferred_element_type=jnp.float32)          # (tn, D)

    # ---- after the last head: feed-forward + residual, store tile ----
    @pl.when(h == nh - 1)
    def _finalize():
        x1 = acc_sc[...]                                        # attn(LN(x)) + x
        x1n = _layernorm(x1, ln2g_ref[...], ln2b_ref[...]).astype(jnp.bfloat16)
        hid = jnp.dot(x1n, w1_ref[...],
                      preferred_element_type=jnp.float32) + fb1_ref[...]
        # exact GELU (torch.nn.GELU default, approximate='none')
        gel = 0.5 * hid * (1.0 + lax.erf(hid * 0.7071067811865476))
        y = jnp.dot(gel.astype(jnp.bfloat16), w2_ref[...],
                    preferred_element_type=jnp.float32) + fb2_ref[...]
        o_ref[0] = (x1 + y).astype(o_ref.dtype)


def transformer_layer(x, p, *, heads, dim_head):
    B, N, D = x.shape
    dh = dim_head
    M = p["w1"].shape[1]
    tn = 128 if (N % 128 == 0) else N        # token tile (lane/sublane friendly)
    num_t = N // tn

    kern = functools.partial(layer_kernel, tn=tn)
    return pl.pallas_call(
        kern,
        out_shape=jax.ShapeDtypeStruct((B, N, D), x.dtype),
        grid=(B, num_t, heads),
        in_specs=[
            pl.BlockSpec((1, N, D), lambda b, t, h: (b, 0, 0)),     # x (resident per b)
            pl.BlockSpec((1, D), lambda b, t, h: (0, 0)),           # ln1 gamma
            pl.BlockSpec((1, D), lambda b, t, h: (0, 0)),           # ln1 beta
            pl.BlockSpec((1, D, dh), lambda b, t, h: (h, 0, 0)),    # Wq (H, D, dh), bf16
            pl.BlockSpec((1, D, dh), lambda b, t, h: (h, 0, 0)),    # Wk
            pl.BlockSpec((1, D, dh), lambda b, t, h: (h, 0, 0)),    # Wv
            pl.BlockSpec((1, dh, D), lambda b, t, h: (h, 0, 0)),    # Wout (H, dh, D)
            pl.BlockSpec((1, D), lambda b, t, h: (0, 0)),           # bout
            pl.BlockSpec((1, D), lambda b, t, h: (0, 0)),           # ln2 gamma
            pl.BlockSpec((1, D), lambda b, t, h: (0, 0)),           # ln2 beta
            pl.BlockSpec((D, M), lambda b, t, h: (0, 0)),           # W1 (bf16)
            pl.BlockSpec((1, M), lambda b, t, h: (0, 0)),           # b1
            pl.BlockSpec((M, D), lambda b, t, h: (0, 0)),           # W2 (bf16)
            pl.BlockSpec((1, D), lambda b, t, h: (0, 0)),           # b2
        ],
        out_specs=pl.BlockSpec((1, tn, D), lambda b, t, h: (b, t, 0)),
        scratch_shapes=[
            pltpu.VMEM((N, D), jnp.bfloat16),    # LN1(x) for the whole block (K/V)
            pltpu.VMEM((tn, D), jnp.float32),    # attention-output accumulator
        ],
        compiler_params=pltpu.CompilerParams(
            dimension_semantics=("parallel", "parallel", "arbitrary")),
    )(x, p["ln1_g"], p["ln1_b"], p["wq"], p["wk"], p["wv"], p["wout"], p["bout"],
      p["ln2_g"], p["ln2_b"], p["w1"], p["b1"], p["w2"], p["b2"])


def transformer_forward(x, params, *, heads, dim_head):
    for p in params:
        x = transformer_layer(x, p, heads=heads, dim_head=dim_head)
    return x


# ------------------------------ parameter setup ------------------------------

def _bayes_linear_sample(key, in_f, out_f, bias):
    """Deterministically 'sample' a BayesLinear weight: w = mu + exp(log_sigma)*eps."""
    k_mu, k_eps, k_bmu, k_beps = jax.random.split(key, 4)
    log_sigma = -5.0
    mu = 0.02 * jax.random.normal(k_mu, (in_f, out_f), jnp.float32)
    eps = jax.random.normal(k_eps, (in_f, out_f), jnp.float32)
    w = mu + jnp.exp(log_sigma) * eps
    if not bias:
        return w, None
    bmu = 0.02 * jax.random.normal(k_bmu, (1, out_f), jnp.float32)
    beps = jax.random.normal(k_beps, (1, out_f), jnp.float32)
    b = bmu + jnp.exp(log_sigma) * beps
    return w, b


def init_transformer_params(key, dim, depth, heads, dim_head, mlp_dim):
    inner = heads * dim_head
    scale = dim_head ** (-0.5)
    params = []
    for _ in range(depth):
        key, k_qkv, k_out, k_f1, k_f2 = jax.random.split(key, 5)
        wqkv, _ = _bayes_linear_sample(k_qkv, dim, 3 * inner, bias=False)
        wout, bout = _bayes_linear_sample(k_out, inner, dim, bias=True)
        w1, b1 = _bayes_linear_sample(k_f1, dim, mlp_dim, bias=True)
        w2, b2 = _bayes_linear_sample(k_f2, mlp_dim, dim, bias=True)

        wq, wk, wv = jnp.split(wqkv, 3, axis=1)          # each (dim, inner)

        def head_major(w):                               # (dim, inner) -> (H, dim, dh)
            return w.reshape(dim, heads, dim_head).transpose(1, 0, 2)

        layer = dict(
            ln1_g=jnp.ones((1, dim), jnp.float32), ln1_b=jnp.zeros((1, dim), jnp.float32),
            ln2_g=jnp.ones((1, dim), jnp.float32), ln2_b=jnp.zeros((1, dim), jnp.float32),
            # 1/sqrt(dh) folded into W_q; weights stored bf16 (MXU-native)
            wq=(head_major(wq) * scale).astype(jnp.bfloat16),
            wk=head_major(wk).astype(jnp.bfloat16),
            wv=head_major(wv).astype(jnp.bfloat16),
            wout=wout.reshape(heads, dim_head, dim).astype(jnp.bfloat16),
            bout=bout,
            w1=w1.astype(jnp.bfloat16), b1=b1,
            w2=w2.astype(jnp.bfloat16), b2=b2,
        )
        params.append(layer)
    return params


# ------------------------------ pure-JAX reference ---------------------------

def transformer_reference(x, params, *, heads, dim_head):
    def ln(v, g, b):
        m = jnp.mean(v, axis=-1, keepdims=True)
        s = jnp.mean((v - m) ** 2, axis=-1, keepdims=True)
        return (v - m) / jnp.sqrt(s + 1e-5) * g + b

    for p in params:
        xn = ln(x, p["ln1_g"], p["ln1_b"])
        wq = p["wq"].astype(jnp.float32)     # (H, D, dh); scale already folded in
        wk = p["wk"].astype(jnp.float32)
        wv = p["wv"].astype(jnp.float32)
        wo = p["wout"].astype(jnp.float32)   # (H, dh, D)
        q = jnp.einsum("bnd,hde->bhne", xn, wq)
        k = jnp.einsum("bnd,hde->bhne", xn, wk)
        v = jnp.einsum("bnd,hde->bhne", xn, wv)
        dots = jnp.einsum("bhqe,bhke->bhqk", q, k)
        attn = jax.nn.softmax(dots, axis=-1)
        o = jnp.einsum("bhqk,bhke->bhqe", attn, v)
        proj = jnp.einsum("bhqe,heD->bqD", o, wo) + p["bout"]
        x = proj + x

        xn = ln(x, p["ln2_g"], p["ln2_b"])
        h = xn @ p["w1"].astype(jnp.float32) + p["b1"]
        g = 0.5 * h * (1.0 + lax.erf(h * 0.7071067811865476))
        x = g @ p["w2"].astype(jnp.float32) + p["b2"] + x
    return x


if __name__ == "__main__":
    # small shapes consistent with the module
    B, N = 2, 8          # batch, sequence length
    dim, depth = 32, 2
    heads, dim_head = 4, 8
    mlp_dim = 64

    key = jax.random.PRNGKey(0)
    k_x, k_p = jax.random.split(key)
    x = jax.random.normal(k_x, (B, N, dim), jnp.float32)
    params = init_transformer_params(k_p, dim, depth, heads, dim_head, mlp_dim)

    out = transformer_forward(x, params, heads=heads, dim_head=dim_head)
    out = jax.block_until_ready(out)

    ref = transformer_reference(x, params, heads=heads, dim_head=dim_head)
    assert out.shape == (B, N, dim)
    # bf16 MXU operands + EUP approx reciprocal -> modest tolerance vs f32 reference
    assert jnp.allclose(out, ref, rtol=2e-2, atol=2e-2), "mismatch vs reference"

    print("KERNEL_OK")
</pallas_src>

<mosaic_0001>
module attributes {stable_mosaic.version = 11 : i64} {
  func.func @layer_kernel(%arg0: i32, %arg1: i32, %arg2: i32, %arg3: memref<1x8x32xf32, #tpu.memory_space<vmem>>, %arg4: memref<1x32xf32, #tpu.memory_space<vmem>>, %arg5: memref<1x32xf32, #tpu.memory_space<vmem>>, %arg6: memref<1x32x8xbf16, #tpu.memory_space<vmem>>, %arg7: memref<1x32x8xbf16, #tpu.memory_space<vmem>>, %arg8: memref<1x32x8xbf16, #tpu.memory_space<vmem>>, %arg9: memref<1x8x32xbf16, #tpu.memory_space<vmem>>, %arg10: memref<1x32xf32, #tpu.memory_space<vmem>>, %arg11: memref<1x32xf32, #tpu.memory_space<vmem>>, %arg12: memref<1x32xf32, #tpu.memory_space<vmem>>, %arg13: memref<32x64xbf16, #tpu.memory_space<vmem>>, %arg14: memref<1x64xf32, #tpu.memory_space<vmem>>, %arg15: memref<64x32xbf16, #tpu.memory_space<vmem>>, %arg16: memref<1x32xf32, #tpu.memory_space<vmem>>, %arg17: memref<1x8x32xf32, #tpu.memory_space<vmem>>, %arg18: memref<8x32xbf16, #tpu.memory_space<vmem>>, %arg19: memref<8x32xf32, #tpu.memory_space<vmem>>) attributes {dimension_semantics = [#tpu.dimension_semantics<parallel>, #tpu.dimension_semantics<parallel>, #tpu.dimension_semantics<arbitrary>], iteration_bounds = array<i64: 2, 1, 4>, scalar_prefetch = 0 : i64, scratch_operands = 2 : i64, tpu.core_type = #tpu.core_type<tc>, window_params = [{transform_indices = @transform_0, window_bounds = array<i64: 1, 8, 32>}, {pipeline_mode = #tpu.pipeline_mode<synchronous>, transform_indices = @transform_1, window_bounds = array<i64: 1, 32>}, {pipeline_mode = #tpu.pipeline_mode<synchronous>, transform_indices = @transform_2, window_bounds = array<i64: 1, 32>}, {transform_indices = @transform_3, window_bounds = array<i64: 1, 32, 8>}, {transform_indices = @transform_4, window_bounds = array<i64: 1, 32, 8>}, {transform_indices = @transform_5, window_bounds = array<i64: 1, 32, 8>}, {transform_indices = @transform_6, window_bounds = array<i64: 1, 8, 32>}, {pipeline_mode = #tpu.pipeline_mode<synchronous>, transform_indices = @transform_7, window_bounds = array<i64: 1, 32>}, {pipeline_mode = #tpu.pipeline_mode<synchronous>, transform_indices = @transform_8, window_bounds = array<i64: 1, 32>}, {pipeline_mode = #tpu.pipeline_mode<synchronous>, transform_indices = @transform_9, window_bounds = array<i64: 1, 32>}, {pipeline_mode = #tpu.pipeline_mode<synchronous>, transform_indices = @transform_10, window_bounds = array<i64: 32, 64>}, {pipeline_mode = #tpu.pipeline_mode<synchronous>, transform_indices = @transform_11, window_bounds = array<i64: 1, 64>}, {pipeline_mode = #tpu.pipeline_mode<synchronous>, transform_indices = @transform_12, window_bounds = array<i64: 64, 32>}, {pipeline_mode = #tpu.pipeline_mode<synchronous>, transform_indices = @transform_13, window_bounds = array<i64: 1, 32>}, {transform_indices = @transform_14, window_bounds = array<i64: 1, 8, 32>}]} {
    %c8_i32 = arith.constant 8 : i32
    %0 = arith.muli %arg1, %c8_i32 : i32
    %1 = tpu.assume_multiple %0, 8 : i32
    %c0_i32 = arith.constant 0 : i32
    %2 = arith.cmpi eq, %arg2, %c0_i32 : i32
    %3 = arith.extui %2 : i1 to i32
    %c0_i32_0 = arith.constant 0 : i32
    %4 = arith.cmpi ne, %3, %c0_i32_0 : i32
    scf.if %4 {
      %c0_27 = arith.constant 0 : index
      %c0_28 = arith.constant 0 : index
      %c0_29 = arith.constant 0 : index
      %43 = vector.load %arg3[%c0_27, %c0_28, %c0_29] : memref<1x8x32xf32, #tpu.memory_space<vmem>>, vector<1x8x32xf32>
      %44 = vector.shape_cast %43 : vector<1x8x32xf32> to vector<8x32xf32>
      %c0_30 = arith.constant 0 : index
      %c0_31 = arith.constant 0 : index
      %45 = vector.load %arg4[%c0_30, %c0_31] : memref<1x32xf32, #tpu.memory_space<vmem>>, vector<1x32xf32>
      %c0_32 = arith.constant 0 : index
      %c0_33 = arith.constant 0 : index
      %46 = vector.load %arg5[%c0_32, %c0_33] : memref<1x32xf32, #tpu.memory_space<vmem>>, vector<1x32xf32>
      %cst_34 = arith.constant dense<0.000000e+00> : vector<8xf32>
      %47 = vector.multi_reduction <add>, %44, %cst_34 [1] : vector<8x32xf32> to vector<8xf32>
      %48 = vector.shape_cast %47 : vector<8xf32> to vector<8x1xf32>
      %cst_35 = arith.constant 3.200000e+01 : f32
      %49 = vector.broadcast %cst_35 : f32 to vector<8x1xf32>
      %50 = arith.divf %48, %49 : vector<8x1xf32>
      %51 = vector.broadcast %50 : vector<8x1xf32> to vector<8x32xf32>
      %52 = arith.subf %44, %51 : vector<8x32xf32>
      %53 = arith.mulf %52, %52 : vector<8x32xf32>
      %cst_36 = arith.constant dense<0.000000e+00> : vector<8xf32>
      %54 = vector.multi_reduction <add>, %53, %cst_36 [1] : vector<8x32xf32> to vector<8xf32>
      %55 = vector.shape_cast %54 : vector<8xf32> to vector<8x1xf32>
      %cst_37 = arith.constant 3.200000e+01 : f32
      %56 = vector.broadcast %cst_37 : f32 to vector<8x1xf32>
      %57 = arith.divf %55, %56 : vector<8x1xf32>
      %58 = vector.broadcast %50 : vector<8x1xf32> to vector<8x32xf32>
      %59 = arith.subf %44, %58 : vector<8x32xf32>
      %cst_38 = arith.constant 9.99999974E-6 : f32
      %60 = vector.broadcast %cst_38 : f32 to vector<8x1xf32>
      %61 = arith.addf %57, %60 : vector<8x1xf32>
      %62 = math.rsqrt %61 : vector<8x1xf32>
      %63 = vector.broadcast %62 : vector<8x1xf32> to vector<8x32xf32>
      %64 = arith.mulf %59, %63 : vector<8x32xf32>
      %65 = vector.broadcast %45 : vector<1x32xf32> to vector<8x32xf32>
      %66 = arith.mulf %64, %65 : vector<8x32xf32>
      %67 = vector.broadcast %46 : vector<1x32xf32> to vector<8x32xf32>
      %68 = arith.addf %66, %67 : vector<8x32xf32>
      %69 = arith.truncf %68 : vector<8x32xf32> to vector<8x32xbf16>
      %c0_39 = arith.constant 0 : index
      %c0_40 = arith.constant 0 : index
      %70 = vector.load %arg18[%c0_39, %c0_40] : memref<8x32xbf16, #tpu.memory_space<vmem>>, vector<8x32xbf16>
      tpu.vector_store %arg18[%c0_39, %c0_40], %69 {strides = array<i32>} : memref<8x32xbf16, #tpu.memory_space<vmem>>, vector<8x32xbf16>,
      %c0_41 = arith.constant 0 : index
      %71 = arith.index_cast %1 : i32 to index
      %c0_42 = arith.constant 0 : index
      %72 = vector.load %arg3[%c0_41, %71, %c0_42] : memref<1x8x32xf32, #tpu.memory_space<vmem>>, vector<1x8x32xf32>
      %73 = vector.shape_cast %72 : vector<1x8x32xf32> to vector<8x32xf32>
      %c0_43 = arith.constant 0 : index
      %c0_44 = arith.constant 0 : index
      %74 = vector.load %arg10[%c0_43, %c0_44] : memref<1x32xf32, #tpu.memory_space<vmem>>, vector<1x32xf32>
      %75 = vector.broadcast %74 : vector<1x32xf32> to vector<8x32xf32>
      %76 = arith.addf %73, %75 : vector<8x32xf32>
      %c0_45 = arith.constant 0 : index
      %c0_46 = arith.constant 0 : index
      %77 = vector.load %arg19[%c0_45, %c0_46] : memref<8x32xf32, #tpu.memory_space<vmem>>, vector<8x32xf32>
      tpu.vector_store %arg19[%c0_45, %c0_46], %76 {strides = array<i32>} : memref<8x32xf32, #tpu.memory_space<vmem>>, vector<8x32xf32>,
    } else {
    }
    %5 = arith.index_cast %1 : i32 to index
    %c0 = arith.constant 0 : index
    %6 = vector.load %arg18[%5, %c0] : memref<8x32xbf16, #tpu.memory_space<vmem>>, vector<8x32xbf16>
    %c0_1 = arith.constant 0 : index
    %c0_2 = arith.constant 0 : index
    %7 = vector.load %arg18[%c0_1, %c0_2] : memref<8x32xbf16, #tpu.memory_space<vmem>>, vector<8x32xbf16>
    %c0_3 = arith.constant 0 : index
    %c0_4 = arith.constant 0 : index
    %c0_5 = arith.constant 0 : index
    %8 = vector.load %arg6[%c0_3, %c0_4, %c0_5] : memref<1x32x8xbf16, #tpu.memory_space<vmem>>, vector<1x32x8xbf16>
    %9 = vector.shape_cast %8 : vector<1x32x8xbf16> to vector<32x8xbf16>
    %cst = arith.constant dense<0.000000e+00> : vector<8x8xf32>
    %10 = tpu.matmul %6, %9, %cst {dimension_numbers = #tpu.dot_dimension_numbers<[1], [0], [0], [1], [0, 0, 1, 1], [], []>} : vector<8x32xbf16>, vector<32x8xbf16>, vector<8x8xf32> -> vector<8x8xf32>
    %c0_6 = arith.constant 0 : index
    %c0_7 = arith.constant 0 : index
    %c0_8 = arith.constant 0 : index
    %11 = vector.load %arg7[%c0_6, %c0_7, %c0_8] : memref<1x32x8xbf16, #tpu.memory_space<vmem>>, vector<1x32x8xbf16>
    %12 = vector.shape_cast %11 : vector<1x32x8xbf16> to vector<32x8xbf16>
    %cst_9 = arith.constant dense<0.000000e+00> : vector<8x8xf32>
    %13 = tpu.matmul %7, %12, %cst_9 {dimension_numbers = #tpu.dot_dimension_numbers<[1], [0], [0], [1], [0, 0, 1, 1], [], []>} : vector<8x32xbf16>, vector<32x8xbf16>, vector<8x8xf32> -> vector<8x8xf32>
    %c0_10 = arith.constant 0 : index
    %c0_11 = arith.constant 0 : index
    %c0_12 = arith.constant 0 : index
    %14 = vector.load %arg8[%c0_10, %c0_11, %c0_12] : memref<1x32x8xbf16, #tpu.memory_space<vmem>>, vector<1x32x8xbf16>
    %15 = vector.shape_cast %14 : vector<1x32x8xbf16> to vector<32x8xbf16>
    %cst_13 = arith.constant dense<0.000000e+00> : vector<8x8xf32>
    %16 = tpu.matmul %7, %15, %cst_13 {dimension_numbers = #tpu.dot_dimension_numbers<[1], [0], [0], [1], [0, 0, 1, 1], [], []>} : vector<8x32xbf16>, vector<32x8xbf16>, vector<8x8xf32> -> vector<8x8xf32>
    %17 = arith.truncf %10 : vector<8x8xf32> to vector<8x8xbf16>
    %18 = arith.truncf %13 : vector<8x8xf32> to vector<8x8xbf16>
    %19 = arith.truncf %16 : vector<8x8xf32> to vector<8x8xbf16>
    %cst_14 = arith.constant dense<0.000000e+00> : vector<8x8xf32>
    %20 = tpu.matmul %17, %18, %cst_14 {dimension_numbers = #tpu.dot_dimension_numbers<[1], [1], [0], [0], [0, 0, 1, 0], [], []>} : vector<8x8xbf16>, vector<8x8xbf16>, vector<8x8xf32> -> vector<8x8xf32>
    %cst_15 = arith.constant dense<0xFF800000> : vector<8xf32>
    %21 = vector.multi_reduction <maximumf>, %20, %cst_15 [1] : vector<8x8xf32> to vector<8xf32>
    %22 = vector.shape_cast %21 : vector<8xf32> to vector<8x1xf32>
    %23 = vector.broadcast %22 : vector<8x1xf32> to vector<8x8xf32>
    %24 = arith.subf %20, %23 : vector<8x8xf32>
    %25 = math.exp %24 : vector<8x8xf32>
    %cst_16 = arith.constant dense<0.000000e+00> : vector<8xf32>
    %26 = vector.multi_reduction <add>, %25, %cst_16 [1] : vector<8x8xf32> to vector<8xf32>
    %27 = vector.shape_cast %26 : vector<8xf32> to vector<8x1xf32>
    %28 = tpu.reciprocal %27 {approx = true} : vector<8x1xf32> -> vector<8x1xf32>
    %29 = vector.broadcast %28 : vector<8x1xf32> to vector<8x8xf32>
    %30 = arith.mulf %25, %29 : vector<8x8xf32>
    %31 = arith.truncf %30 : vector<8x8xf32> to vector<8x8xbf16>
    %cst_17 = arith.constant dense<0.000000e+00> : vector<8x8xf32>
    %32 = tpu.matmul %31, %19, %cst_17 {dimension_numbers = #tpu.dot_dimension_numbers<[1], [0], [0], [1], [0, 0, 1, 1], [], []>} : vector<8x8xbf16>, vector<8x8xbf16>, vector<8x8xf32> -> vector<8x8xf32>
    %c0_18 = arith.constant 0 : index
    %c0_19 = arith.constant 0 : index
    %33 = vector.load %arg19[%c0_18, %c0_19] : memref<8x32xf32, #tpu.memory_space<vmem>>, vector<8x32xf32>
    %34 = arith.truncf %32 : vector<8x8xf32> to vector<8x8xbf16>
    %c0_20 = arith.constant 0 : index
    %c0_21 = arith.constant 0 : index
    %c0_22 = arith.constant 0 : index
    %35 = vector.load %arg9[%c0_20, %c0_21, %c0_22] : memref<1x8x32xbf16, #tpu.memory_space<vmem>>, vector<1x8x32xbf16>
    %36 = vector.shape_cast %35 : vector<1x8x32xbf16> to vector<8x32xbf16>
    %cst_23 = arith.constant dense<0.000000e+00> : vector<8x32xf32>
    %37 = tpu.matmul %34, %36, %cst_23 {dimension_numbers = #tpu.dot_dimension_numbers<[1], [0], [0], [1], [0, 0, 1, 1], [], []>} : vector<8x8xbf16>, vector<8x32xbf16>, vector<8x32xf32> -> vector<8x32xf32>
    %38 = arith.addf %33, %37 : vector<8x32xf32>
    %c0_24 = arith.constant 0 : index
    %c0_25 = arith.constant 0 : index
    %39 = vector.load %arg19[%c0_24, %c0_25] : memref<8x32xf32, #tpu.memory_space<vmem>>, vector<8x32xf32>
    tpu.vector_store %arg19[%c0_24, %c0_25], %38 {strides = array<i32>} : memref<8x32xf32, #tpu.memory_space<vmem>>, vector<8x32xf32>,
    %c3_i32 = arith.constant 3 : i32
    %40 = arith.cmpi eq, %arg2, %c3_i32 : i32
    %41 = arith.extui %40 : i1 to i32
    %c0_i32_26 = arith.constant 0 : i32
    %42 = arith.cmpi ne, %41, %c0_i32_26 : i32
    scf.if %42 {
      %c0_27 = arith.constant 0 : index
      %c0_28 = arith.constant 0 : index
      %43 = vector.load %arg19[%c0_27, %c0_28] : memref<8x32xf32, #tpu.memory_space<vmem>>, vector<8x32xf32>
      %c0_29 = arith.constant 0 : index
      %c0_30 = arith.constant 0 : index
      %44 = vector.load %arg11[%c0_29, %c0_30] : memref<1x32xf32, #tpu.memory_space<vmem>>, vector<1x32xf32>
      %c0_31 = arith.constant 0 : index
      %c0_32 = arith.constant 0 : index
      %45 = vector.load %arg12[%c0_31, %c0_32] : memref<1x32xf32, #tpu.memory_space<vmem>>, vector<1x32xf32>
      %cst_33 = arith.constant dense<0.000000e+00> : vector<8xf32>
      %46 = vector.multi_reduction <add>, %43, %cst_33 [1] : vector<8x32xf32> to vector<8xf32>
      %47 = vector.shape_cast %46 : vector<8xf32> to vector<8x1xf32>
      %cst_34 = arith.constant 3.200000e+01 : f32
      %48 = vector.broadcast %cst_34 : f32 to vector<8x1xf32>
      %49 = arith.divf %47, %48 : vector<8x1xf32>
      %50 = vector.broadcast %49 : vector<8x1xf32> to vector<8x32xf32>
      %51 = arith.subf %43, %50 : vector<8x32xf32>
      %52 = arith.mulf %51, %51 : vector<8x32xf32>
      %cst_35 = arith.constant dense<0.000000e+00> : vector<8xf32>
      %53 = vector.multi_reduction <add>, %52, %cst_35 [1] : vector<8x32xf32> to vector<8xf32>
      %54 = vector.shape_cast %53 : vector<8xf32> to vector<8x1xf32>
      %cst_36 = arith.constant 3.200000e+01 : f32
      %55 = vector.broadcast %cst_36 : f32 to vector<8x1xf32>
      %56 = arith.divf %54, %55 : vector<8x1xf32>
      %57 = vector.broadcast %49 : vector<8x1xf32> to vector<8x32xf32>
      %58 = arith.subf %43, %57 : vector<8x32xf32>
      %cst_37 = arith.constant 9.99999974E-6 : f32
      %59 = vector.broadcast %cst_37 : f32 to vector<8x1xf32>
      %60 = arith.addf %56, %59 : vector<8x1xf32>
      %61 = math.rsqrt %60 : vector<8x1xf32>
      %62 = vector.broadcast %61 : vector<8x1xf32> to vector<8x32xf32>
      %63 = arith.mulf %58, %62 : vector<8x32xf32>
      %64 = vector.broadcast %44 : vector<1x32xf32> to vector<8x32xf32>
      %65 = arith.mulf %63, %64 : vector<8x32xf32>
      %66 = vector.broadcast %45 : vector<1x32xf32> to vector<8x32xf32>
      %67 = arith.addf %65, %66 : vector<8x32xf32>
      %68 = arith.truncf %67 : vector<8x32xf32> to vector<8x32xbf16>
      %c0_38 = arith.constant 0 : index
      %c0_39 = arith.constant 0 : index
      %69 = vector.load %arg13[%c0_38, %c0_39] : memref<32x64xbf16, #tpu.memory_space<vmem>>, vector<32x64xbf16>
      %cst_40 = arith.constant dense<0.000000e+00> : vector<8x64xf32>
      %70 = tpu.matmul %68, %69, %cst_40 {dimension_numbers = #tpu.dot_dimension_numbers<[1], [0], [0], [1], [0, 0, 1, 1], [], []>} : vector<8x32xbf16>, vector<32x64xbf16>, vector<8x64xf32> -> vector<8x64xf32>
      %c0_41 = arith.constant 0 : index
      %c0_42 = arith.constant 0 : index
      %71 = vector.load %arg14[%c0_41, %c0_42] : memref<1x64xf32, #tpu.memory_space<vmem>>, vector<1x64xf32>
      %72 = vector.broadcast %71 : vector<1x64xf32> to vector<8x64xf32>
      %73 = arith.addf %70, %72 : vector<8x64xf32>
      %cst_43 = arith.constant 5.000000e-01 : f32
      %74 = vector.broadcast %cst_43 : f32 to vector<8x64xf32>
      %75 = arith.mulf %74, %73 : vector<8x64xf32>
      %cst_44 = arith.constant 0.707106769 : f32
      %76 = vector.broadcast %cst_44 : f32 to vector<8x64xf32>
      %77 = arith.mulf %73, %76 : vector<8x64xf32>
      %78 = math.erf %77 : vector<8x64xf32>
      %cst_45 = arith.constant 1.000000e+00 : f32
      %79 = vector.broadcast %cst_45 : f32 to vector<8x64xf32>
      %80 = arith.addf %79, %78 : vector<8x64xf32>
      %81 = arith.mulf %75, %80 : vector<8x64xf32>
      %82 = arith.truncf %81 : vector<8x64xf32> to vector<8x64xbf16>
      %c0_46 = arith.constant 0 : index
      %c0_47 = arith.constant 0 : index
      %83 = vector.load %arg15[%c0_46, %c0_47] : memref<64x32xbf16, #tpu.memory_space<vmem>>, vector<64x32xbf16>
      %cst_48 = arith.constant dense<0.000000e+00> : vector<8x32xf32>
      %84 = tpu.matmul %82, %83, %cst_48 {dimension_numbers = #tpu.dot_dimension_numbers<[1], [0], [0], [1], [0, 0, 1, 1], [], []>} : vector<8x64xbf16>, vector<64x32xbf16>, vector<8x32xf32> -> vector<8x32xf32>
      %c0_49 = arith.constant 0 : index
      %c0_50 = arith.constant 0 : index
      %85 = vector.load %arg16[%c0_49, %c0_50] : memref<1x32xf32, #tpu.memory_space<vmem>>, vector<1x32xf32>
      %86 = vector.broadcast %85 : vector<1x32xf32> to vector<8x32xf32>
      %87 = arith.addf %84, %86 : vector<8x32xf32>
      %88 = arith.addf %43, %87 : vector<8x32xf32>
      %c0_51 = arith.constant 0 : index
      %c0_52 = arith.constant 0 : index
      %c0_53 = arith.constant 0 : index
      %89 = vector.load %arg17[%c0_51, %c0_52, %c0_53] : memref<1x8x32xf32, #tpu.memory_space<vmem>>, vector<1x8x32xf32>
      %90 = vector.shape_cast %89 : vector<1x8x32xf32> to vector<8x32xf32>
      %91 = vector.shape_cast %88 : vector<8x32xf32> to vector<1x8x32xf32>
      tpu.vector_store %arg17[%c0_51, %c0_52, %c0_53], %91 {strides = array<i32>} : memref<1x8x32xf32, #tpu.memory_space<vmem>>, vector<1x8x32xf32>,
    } else {
    }
    return
  }
  func.func @transform_0(%arg0: i32, %arg1: i32, %arg2: i32) -> (i32, i32, i32) {
    %c0_i32 = arith.constant 0 : i32
    %c0_i32_0 = arith.constant 0 : i32
    %c0_i32_1 = arith.constant 0 : i32
    return %arg0, %c0_i32, %c0_i32_0 : i32, i32, i32
  }
  func.func @transform_1(%arg0: i32, %arg1: i32, %arg2: i32) -> (i32, i32) {
    %c0_i32 = arith.constant 0 : i32
    %c0_i32_0 = arith.constant 0 : i32
    %c0_i32_1 = arith.constant 0 : i32
    return %c0_i32, %c0_i32_0 : i32, i32
  }
  func.func @transform_2(%arg0: i32, %arg1: i32, %arg2: i32) -> (i32, i32) {
    %c0_i32 = arith.constant 0 : i32
    %c0_i32_0 = arith.constant 0 : i32
    %c0_i32_1 = arith.constant 0 : i32
    return %c0_i32, %c0_i32_0 : i32, i32
  }
  func.func @transform_3(%arg0: i32, %arg1: i32, %arg2: i32) -> (i32, i32, i32) {
    %c0_i32 = arith.constant 0 : i32
    %c0_i32_0 = arith.constant 0 : i32
    %c0_i32_1 = arith.constant 0 : i32
    return %arg2, %c0_i32, %c0_i32_0 : i32, i32, i32
  }
  func.func @transform_4(%arg0: i32, %arg1: i32, %arg2: i32) -> (i32, i32, i32) {
    %c0_i32 = arith.constant 0 : i32
    %c0_i32_0 = arith.constant 0 : i32
    %c0_i32_1 = arith.constant 0 : i32
    return %arg2, %c0_i32, %c0_i32_0 : i32, i32, i32
  }
  func.func @transform_5(%arg0: i32, %arg1: i32, %arg2: i32) -> (i32, i32, i32) {
    %c0_i32 = arith.constant 0 : i32
    %c0_i32_0 = arith.constant 0 : i32
    %c0_i32_1 = arith.constant 0 : i32
    return %arg2, %c0_i32, %c0_i32_0 : i32, i32, i32
  }
  func.func @transform_6(%arg0: i32, %arg1: i32, %arg2: i32) -> (i32, i32, i32) {
    %c0_i32 = arith.constant 0 : i32
    %c0_i32_0 = arith.constant 0 : i32
    %c0_i32_1 = arith.constant 0 : i32
    return %arg2, %c0_i32, %c0_i32_0 : i32, i32, i32
  }
  func.func @transform_7(%arg0: i32, %arg1: i32, %arg2: i32) -> (i32, i32) {
    %c0_i32 = arith.constant 0 : i32
    %c0_i32_0 = arith.constant 0 : i32
    %c0_i32_1 = arith.constant 0 : i32
    return %c0_i32, %c0_i32_0 : i32, i32
  }
  func.func @transform_8(%arg0: i32, %arg1: i32, %arg2: i32) -> (i32, i32) {
    %c0_i32 = arith.constant 0 : i32
    %c0_i32_0 = arith.constant 0 : i32
    %c0_i32_1 = arith.constant 0 : i32
    return %c0_i32, %c0_i32_0 : i32, i32
  }
  func.func @transform_9(%arg0: i32, %arg1: i32, %arg2: i32) -> (i32, i32) {
    %c0_i32 = arith.constant 0 : i32
    %c0_i32_0 = arith.constant 0 : i32
    %c0_i32_1 = arith.constant 0 : i32
    return %c0_i32, %c0_i32_0 : i32, i32
  }
  func.func @transform_10(%arg0: i32, %arg1: i32, %arg2: i32) -> (i32, i32) {
    %c0_i32 = arith.constant 0 : i32
    %c0_i32_0 = arith.constant 0 : i32
    %c0_i32_1 = arith.constant 0 : i32
    return %c0_i32, %c0_i32_0 : i32, i32
  }
  func.func @transform_11(%arg0: i32, %arg1: i32, %arg2: i32) -> (i32, i32) {
    %c0_i32 = arith.constant 0 : i32
    %c0_i32_0 = arith.constant 0 : i32
    %c0_i32_1 = arith.constant 0 : i32
    return %c0_i32, %c0_i32_0 : i32, i32
  }
  func.func @transform_12(%arg0: i32, %arg1: i32, %arg2: i32) -> (i32, i32) {
    %c0_i32 = arith.constant 0 : i32
    %c0_i32_0 = arith.constant 0 : i32
    %c0_i32_1 = arith.constant 0 : i32
    return %c0_i32, %c0_i32_0 : i32, i32
  }
  func.func @transform_13(%arg0: i32, %arg1: i32, %arg2: i32) -> (i32, i32) {
    %c0_i32 = arith.constant 0 : i32
    %c0_i32_0 = arith.constant 0 : i32
    %c0_i32_1 = arith.constant 0 : i32
    return %c0_i32, %c0_i32_0 : i32, i32
  }
  func.func @transform_14(%arg0: i32, %arg1: i32, %arg2: i32) -> (i32, i32, i32) {
    %c0_i32 = arith.constant 0 : i32
    %c0_i32_0 = arith.constant 0 : i32
    return %arg0, %arg1, %c0_i32 : i32, i32, i32
  }
}

</mosaic_0001>

<bundles_post_ra>
// kernel: tpu_custom_call.1
= control target key start
LH: loop header
LB: loop body
LE: loop exit
PB: predicated region body
PF: predicated region fallthrough
CT: control target
= control target key end

     0   :  { %s1701_s0 = inlined_call_operand.vmem [shape: f32[2,8,32], index: 0, kind: input, shape index: {}]   ;;  %s1702_s1 = inlined_call_operand.vmem [shape: f32[1,32], index: 1, kind: input, shape index: {}]   ;;  %s1703_s2 = inlined_call_operand.vmem [shape: f32[1,32], index: 2, kind: input, shape index: {}]   ;;  %s1704_s3 = inlined_call_operand.vmem [shape: bf16[4,32,8], index: 3, kind: input, shape index: {}]   ;;  %s1705_s4 = inlined_call_operand.vmem [shape: bf16[4,32,8], index: 4, kind: input, shape index: {}]   ;;  %s1706_s5 = inlined_call_operand.vmem [shape: bf16[4,32,8], index: 5, kind: input, shape index: {}]   ;;  %s1707_s6 = inlined_call_operand.vmem [shape: bf16[4,8,32], index: 6, kind: input, shape index: {}]   ;;  %s1708_s7 = inlined_call_operand.vmem [shape: f32[1,32], index: 7, kind: input, shape index: {}]   ;;  %s1709_s8 = inlined_call_operand.vmem [shape: f32[1,32], index: 8, kind: input, shape index: {}]   ;;  %s1710_s9 = inlined_call_operand.vmem [shape: f32[1,32], index: 9, kind: input, shape index: {}]   ;;  %s1711_s10 = inlined_call_operand.vmem [shape: bf16[32,64], index: 10, kind: input, shape index: {}]   ;;  %s1712_s11 = inlined_call_operand.vmem [shape: f32[1,64], index: 11, kind: input, shape index: {}]   ;;  %s1713_s12 = inlined_call_operand.vmem [shape: bf16[64,32], index: 12, kind: input, shape index: {}]   ;;  %s1714_s13 = inlined_call_operand.vmem [shape: f32[1,32], index: 13, kind: input, shape index: {}]   ;;  %s1715_s14 = inlined_call_operand.hbm [shape: f32[2,8,32], index: 14, kind: output, shape index: {}]  }
   0x1   :  { %1731 = sst [smem:[#allocation19_spill]] %s1701_s0 }
   0x2   :  { %1732 = sst [smem:[#allocation20_spill]] %s1713_s12 }
   0x3   :  { %1733 = sst [smem:[#allocation21_spill]] %s1714_s13 }
   0x4   :  { %1734 = sst [smem:[#allocation22_spill]] %s1715_s14 }
   0x5   :  { %19 = vsyncpa [#allocation5], 0 }
   0x6   :  { %21 = vsyncpa [#allocation5 + $0x1], 0  ;;  %s1481_s29 = smov 0   ;;  %s1483_s30 = smov 0  }
   0x7   :  { %s1485_s15 = smov 0   ;;  %s1487_s16 = smov 0  }
   0x8   :  { %s1489_s17 = smov 0   ;;  %s1491_s18 = smov 0  }
   0x9   :  { %s1493_s19 = smov 0   ;;  %s1495_s20 = smov 0  }
   0xa LB: > { %1735 = sst [smem:[#allocation7_spill]] %s1374_s29  ;;  %s1122_s21 = sadd.s32 4294967295, %s1402_s20   ;;  %s1402_s20 = sphi %s1495_s20, %s27_s20   ;;  %s1398_s19 = sphi %s1493_s19, %s1768_s19   ;;  %s1394_s18 = sphi %s1491_s18, %s1767_s18   ;;  %s1390_s17 = sphi %s1489_s17, %s1766_s17   ;;  %s1386_s16 = sphi %s1487_s16, %s1765_s16   ;;  %s1382_s15 = sphi %s1485_s15, %s1764_s15   ;;  %s1378_s30 = sphi %s1483_s30, %s1763_s30   ;;  %s1374_s29 = sphi %s1481_s29, %s1762_s29  }
   0xb   : > { %1736 = sst [smem:[#allocation8_spill]] %s1378_s30  ;;  %s1123_s22 = sadd.s32 4294967294, %s1402_s20  }
   0xc   : > { %1737 = sst [smem:[#allocation9_spill]] %s1382_s15  ;;  %s39_s23 = sadd.s32 1, %s1394_s18 }
   0xd   : > { %1738 = sst [smem:[#allocation10_spill]] %s1390_s17  ;;  %p40_p0 = scmp.ge.s32.totalorder %s39_s23, 4 }
   0xe   : > { %1739 = sst [smem:[#allocation11_spill]] %s1394_s18  ;;  %s46_s24 = sadd.s32 1, %s1398_s19 }
   0xf   : > { %1740 = sst [smem:[#allocation12_spill]] %s1398_s19  ;;  %p384_p1 = scmp.ne.s32.totalorder %s1382_s15, %s1378_s30 }
  0x10   : > { %1741 = sst [smem:[#allocation13_spill]] %s1402_s20  ;;  %p385_p2 = scmp.eq.s32.totalorder %s1122_s21, 7 }
  0x11   : > { %s1770_s23 = smov (%p40_p0, %s39_s23), 0  ;;  %s1772_s24 = smov (!%p40_p0, %s46_s24), %s1398_s19 }
  0x12   : > { %1742 = sst [smem:[#allocation14_spill]] %s1770_s23  ;;  %p1530_p3 = por %p385_p2, %p384_p1 }
  0x13   : > { %p390_p4 = scmp.ne.s32.totalorder %s1378_s30, %s1374_s29  ;;  %p48_p5 = scmp.ge.s32.totalorder %s1772_s24, 2 }
  0x14   : > { %s1743_s25 = scalar_select %p1530_p3, 1, 0 }
  0x15   : > { %p391_p6 = scmp.eq.s32.totalorder %s1123_s22, 7  ;;  %p1126_p7 = scmp.ge.s32.totalorder %s1402_s20, 1 }
  0x16   : > { %1744 = sst [smem:[#allocation15_spill]] %s1743_s25  ;;  %p474_p8 = scmp.lt.s32.totalorder %s1402_s20, 9 }
  0x17   : > { %s1774_s24 = smov (%p48_p5, %s1772_s24), 0  ;;  %p1540_p9 = por %p391_p6, %p390_p4 }
  0x18   : > { %1745 = sst [smem:[#allocation16_spill]] %s1774_s24  ;;  %p475_p10 = pnand %p1126_p7, %p474_p8 }
  0x19   : > { %s1746_s26 = scalar_select %p1540_p9, 1, 0 }
  0x1a   : > { %s369_s27 = ssub.s32 %s1398_s19, %s1774_s24  ;;  %s374_s28 = sadd.s32 1, %s1382_s15 }
  0x1b   : > { %1747 = sst [smem:[#allocation17_spill]] %s1746_s26  ;;  %p372_p11 = scmp.eq.s32.totalorder %s369_s27, 0 }
  0x1c   : > { %478 = sbr.rel (%p475_p10) target bundleno = 1720 (0x6b8), region = 76  ;;  %s1727_s22 = sand.u32 (!%p475_p10), 1, %s1378_s30  }
  0x1d   : > { %s1548_s21 = scalar_select %p372_p11, %s1382_s15, %s374_s28  }
  0x1e   : > { %p538_p12 = scmp.lt.s32.totalorder (!%p475_p10), %s1390_s17, 1  ;;  %s1554_s23 = sshll.u32 (!%p475_p10), %s1727_s22, 3 }
  0x1f   : > { %1748 = sst [smem:[#allocation18_spill]] %s1548_s21  ;;  %p542_p13 = scmp.lt.s32.totalorder (!%p475_p10), %s1386_s16, 3 }
  0x20   : > { %s1749_s0 = sld [smem:[#allocation19_spill]] (!%p475_p10)  ;;  %s537_s28 = scalar_lea.vmem (!%p475_p10), [#allocation4], %s1554_s23 }
  0x21   : > { %s539_s18 = scalar_select %p538_p12, %s1390_s17, 1 }
  0x22   : > { %s543_s24 = scalar_select %p542_p13, %s1386_s16, 3 }
  0x23   : > { %s1128_s19 = sshll.u32 %s539_s18, 3  ;;  %p1136_p0 = scmp.ne.s32.totalorder %s1386_s16, 0 }
  0x24   : > { %s1199_s15 = sshll.u32 %s543_s24, 4  ;;  %s1135_s18 = sshll.u32 %s543_s24, 2 }
  0x25   : > { %s1565_s20 = scalar_lea.vmem %s1704_s3, %s1199_s15  ;;  %s1570_s22 = scalar_lea.vmem %s1705_s4, %s1199_s15 }
  0x26   : > { %s541_s21 = scalar_lea.vmem %s1749_s0, %s1128_s19  ;;  %s1575_s17 = scalar_lea.vmem %s1706_s5, %s1199_s15 }
  0x27   : > { %s1580_s19 = scalar_lea.vmem %s1707_s6, %s1135_s18  ;;  %566 = sbr.rel (%p1136_p0) target bundleno = 316 (0x13c), region = 80 }
  0x2c   : > { %v567_v0 = vld [vmem:[%s541_s21] sm:$0xff]  ;;  %vm570_vm0 = vcmask 261120   ;;  %v1404_v4 = vmov 32.0   ;;  %vm609_vm5 = vcmask 257024  }
  0x2d   : > { %v1287_v1 = vld [vmem:[%s1708_s7] ss:$0 sm:$0xff]  ;;  %v571_v2 = vsel %vm570_vm0, %v567_v0, 0.0  ;;  %1290 = vrcp.f32 %v1404_v4 }
  0x2e   : > { %v617_v3 = vadd.f32 %v1287_v1, %v567_v0  ;;  %572 = vadd.xlane.f32.xlu0 %v571_v2  ;;  %v1288_v25 = vld [vmem:[%s1702_s1] ss:$0 sm:$0xff] }
  0x2f   : > { %v1289_v27 = vld [vmem:[%s1703_s2] ss:$0 sm:$0xff] }
  0x30   : > { %618 = vst.msk [vmem:[#allocation3] sm:$0xff] %vm570_vm0, %v617_v3 }
  0x33   : > { %v1291_v5 = vpop.eup %1290 }
  0x34   : > { %v575_v6 = vmul.f32 32.0, %v1291_v5  ;;  %vm579_vm1 = vweird.f32 %v1291_v5 }
  0x36   : > { %v576_v7 = vsub.f32 1.0, %v575_v6 }
  0x38   : > { %v577_v8 = vmul.f32 %v1291_v5, %v576_v7 }
  0x3a   : > { %v578_v9 = vadd.f32 %v1291_v5, %v577_v8 }
  0x3c   : > { %v580_v10 = vsel %vm579_vm1, %v1291_v5, %v578_v9 }
  0xa1   : > { %v573_v11 = vpop.xlane.xlu0 %572 }
  0xa2   : > { %v581_v12 = vmul.f32 %v580_v10, %v573_v11 }
  0xa4   : > { %v582_v13 = vsub.f32 %v567_v0, %v581_v12 }
  0xa6   : > { %v583_v14 = vmul.f32 %v582_v13, %v582_v13 }
  0xa8   : > { %v584_v15 = vsel %vm570_vm0, %v583_v14, 0.0 }
  0xa9   : > { %585 = vadd.xlane.f32.xlu0 %v584_v15 }
 0x11c   : > { %v586_v16 = vpop.xlane.xlu0 %585 }
 0x11d   : > { %v587_v17 = vmul.f32 %v586_v16, %v580_v10 }
 0x11f   : > { %v588_v18 = vadd.f32 1e-05, %v587_v17 }
 0x121   : > { %1292 = vrsqrt.f32 %v588_v18  ;;  %vm595_vm3 = vweird.f32 %v588_v18 }
 0x127   : > { %v1293_v19 = vpop.eup %1292 }
 0x128   : > { %v590_v20 = vmul.f32 %v1293_v19, %v588_v18  ;;  %vm596_vm2 = vweird.f32 %v1293_v19 }
 0x129   : > { %vm597_vm4 = vmor %vm595_vm3, %vm596_vm2 }
 0x12a   : > { %v591_v21 = vmul.f32 %v1293_v19, %v590_v20 }
 0x12c   : > { %v592_v22 = vmul.f32 0.5, %v591_v21 }
 0x12e   : > { %v593_v23 = vsub.f32 1.5, %v592_v22 }
 0x130   : > { %v594_v24 = vmul.f32 %v1293_v19, %v593_v23 }
 0x132   : > { %v598_v26 = vsel %vm597_vm4, %v1293_v19, %v594_v24 }
 0x133   : > { %v599_v28 = vmul.f32 %v598_v26, %v582_v13 }
 0x135   : > { %v603_v29 = vmul.f32 %v1288_v25, %v599_v28 }
 0x137   : > { %v607_v30 = vadd.f32 %v1289_v27, %v603_v29 }
 0x139   : > { %v608_v31 = vpack.c.bf16 %v607_v30, %v607_v30 }
 0x13b   : > { %610 = vst.msk [vmem:[#allocation2] sm:$0xf] %vm609_vm5, %v608_v31 }
 0x13c PF: > { %v1203_v32 = vld [vmem:[%s1565_s20 + $0x8] sm:$0xff]  ;;  %v1202_v34 = vld [vmem:[%s1565_s20] sm:$0xff]  ;;  %vm641_vm6 = vcmask 261120   ;;  %vm722_vm7 = vcmask 64512   ;;  %vm757_vm8 = vcmask 1043456   ;;  %p1167_p1 = scmp.ne.s32.totalorder %s1386_s16, 3 }
 0x13d   : > { %v1205_v33 = vld [vmem:[%s1570_s22 + $0x8] sm:$0xff]  ;;  %651 = vmatpush.bf16.msra.mxu0 %v1203_v32  ;;  %v1204_v35 = vld [vmem:[%s1570_s22] sm:$0xff]  ;;  %s1750_s29 = sld [smem:[#allocation20_spill]] (!%p1167_p1) }
 0x13e   : > { %683 = vmatpush.bf16.msra.mxu1 %v1205_v33  ;;  %v1207_v45 = vld [vmem:[%s1575_s17 + $0x8] sm:$0xff]  ;;  %v1206_v46 = vld [vmem:[%s1575_s17] sm:$0xff]  ;;  %s1752_s26 = sld [smem:[#allocation21_spill]] (!%p1167_p1) }
 0x13f   : > { %712 = vmatpush.bf16.msra.mxu2 %v1207_v45  ;;  %v776_v59 = vld [vmem:[%s1580_s19] sm:$0xf]  ;;  %v774_v4 = vld [vmem:[#allocation3] sm:$0xff] }
 0x140   : > { %v781_v60 = vsel %vm757_vm8, %v776_v59, 0 }
 0x141   : > { %652 = vmatpush.bf16.msra.mxu0 %v1202_v34 }
 0x142   : > { %684 = vmatpush.bf16.msra.mxu1 %v1204_v35  ;;  %v623_v36 = vld [vmem:[#allocation2] sm:$0xf] }
 0x143   : > { %v624_v37 = vld [vmem:[#allocation2] sm:$0xf]  ;;  %713 = vmatpush.bf16.msra.mxu2 %v1206_v46  ;;  %s1751_s12 = smov (!%p1167_p1), %s1750_s29 }
 0x144   : > { %1145 = vmatmul.msk.bf16.vlgmr.msra.gmra.mxu0 %vm641_vm6, %v623_v36 }
 0x145   : > { %1154 = vmatmul.msk.bf16.vlgmr.msra.gmra.mxu1 %vm641_vm6, %v624_v37 }
 0x146   : > { %1163 = vmatmul.msk.bf16.vlgmr.msra.gmra.mxu2 %vm641_vm6, %v624_v37  ;;  %790 = vmatpush.bf16.msrb.mxu1 %v781_v60 }
 0x1c1   : > { %v654_v38 = vpop.f32.mrf.mxu0 }
 0x1c2   : > { %v686_v39 = vpop.f32.mrf.mxu1  ;;  %v719_v42 = vpack.c.bf16 %v654_v38, %v654_v38 }
 0x1c3   : > { %v720_v40 = vpack.c.bf16 %v686_v39, %v686_v39 }
 0x1c5   : > { %v727_v41 = vsel %vm722_vm7, %v720_v40, 0 }
 0x1c6   : > { %736 = vmatpush.bf16.xpose.msra.mxu3 %v727_v41 }
 0x1c9   : > { %v656_v43 = vpop.f32.mrf.mxu0  ;;  %v715_v50 = vpop.f32.mrf.mxu2 }
 0x1ca   : > { %v688_v44 = vpop.f32.mrf.mxu1  ;;  %v721_v52 = vpack.c.bf16 %v715_v50, %v715_v50 }
 0x1cc   : > { %v759_v54 = vsel %vm757_vm8, %v721_v52, 0 }
 0x1cd   : > { %1164 = vmatmul.msk.bf16.vlgmr.msra.gmra.mxu3 %vm722_vm7, %v719_v42  ;;  %768 = vmatpush.bf16.msrb.mxu0 %v759_v54 }
 0x1d1   : > { %v717_v56 = vpop.f32.mrf.mxu2 }
 0x250   : > { %v738_v47 = vpop.f32.mrf.mxu3 }
 0x251   : > { %v742_v48 = vsel %vm722_vm7, %v738_v47, -inf }
 0x252   : > { %743 = vmax.xlane.f32.xlu0 %v742_v48 }
 0x258   : > { %v740_v49 = vpop.f32.mrf.mxu3 }
 0x2c5   : > { %v744_v51 = vpop.xlane.xlu0 %743 }
 0x2c6   : > { %v745_v53 = vsub.f32 %v738_v47, %v744_v51 }
 0x2c8   : > { %v746_v55 = vmul.f32 1.442695, %v745_v53 }
 0x2ca   : > { %1294 = vpow2.f32 %v746_v55 }
 0x2d0   : > { %v1295_v57 = vpop.eup %1294 }
 0x2d1   : > { %v748_v58 = vsel %vm722_vm7, %v1295_v57, 0.0 }
 0x2d2   : > { %749 = vadd.xlane.f32.xlu0 %v748_v58 }
 0x345   : > { %v750_v61 = vpop.xlane.xlu0 %749 }
 0x346   : > { %1296 = vrcp.f32 %v750_v61 }
 0x34c   : > { %v1297_v62 = vpop.eup %1296 }
 0x34d   : > { %v752_v63 = vmul.f32 %v1297_v62, %v1295_v57 }
 0x34f   : > { %v753_v0 = vpack.c.bf16 %v752_v63, %v752_v63 }
 0x351   : > { %1165 = vmatmul.msk.bf16.vlgmr.msrb.gmra.mxu0 %vm722_vm7, %v753_v0 }
 0x3ce   : > { %v770_v1 = vpop.f32.mrf.mxu0 }
 0x3cf   : > { %v775_v2 = vpack.c.bf16 %v770_v1, %v770_v1 }
 0x3d1   : > { %1166 = vmatmul.msk.bf16.vlgmr.msrb.gmra.mxu1 %vm722_vm7, %v775_v2 }
 0x3d6   : > { %v772_v3 = vpop.f32.mrf.mxu0 }
 0x44e   : > { %v792_v5 = vpop.f32.mrf.mxu1 }
 0x44f   : > { %v796_v6 = vadd.f32 %v792_v5, %v774_v4 }
 0x451   : > { %797 = vst.msk [vmem:[#allocation3] sm:$0xff] %vm641_vm6, %v796_v6 }
 0x452   : > { %801 = sbr.rel (%p1167_p1) target bundleno = 1698 (0x6a2), region = 84 }
 0x456   : > { %v794_v7 = vpop.f32.mrf.mxu1 }
 0x457   : > { %v1405_v10 = vmov 32.0   ;;  %v1209_v22 = vld [vmem:[%s1711_s10 + $0x8] sm:$0xff]  ;;  %v1208_v23 = vld [vmem:[%s1711_s10] sm:$0xff]  ;;  %v1213_v47 = vld [vmem:[%s1750_s29 + $0x18] sm:$0xff]  ;;  %vm960_vm1 = vcmask 523264  }
 0x458   : > { %v1614_v8 = vld [vmem:[#allocation3] sm:$0xff]  ;;  %1302 = vrcp.f32 %v1405_v10  ;;  %872 = vmatpush.bf16.msra.mxu0 %v1209_v22  ;;  %v1298_v33 = vld [vmem:[%s1709_s8] ss:$0 sm:$0xff]  ;;  %968 = vmatpush.bf16.msra.mxu1 %v1213_v47  ;;  %v1212_v52 = vld [vmem:[%s1751_s12 + $0x10] sm:$0xff] }
 0x459   : > { %v805_v9 = vsel %vm641_vm6, %v1614_v8, 0.0  ;;  %v1299_v36 = vld [vmem:[%s1710_s9] ss:$0 sm:$0xff]  ;;  %v1211_v55 = vld [vmem:[%s1751_s12 + $0x8] sm:$0xff] }
 0x45a   : > { %806 = vadd.xlane.f32.xlu0 %v805_v9  ;;  %v1300_v40 = vld [vmem:[%s1712_s11] ss:$0 sm:$0xff] }
 0x45b   : > { %v1210_v59 = vld [vmem:[%s1751_s12] sm:$0xff] }
 0x45c   : > { %873 = vmatpush.bf16.msra.mxu0 %v1208_v23  ;;  %969 = vmatpush.bf16.msra.mxu1 %v1212_v52 }
 0x45e   : > { %v1303_v11 = vpop.eup %1302 }
 0x45f   : > { %v809_v12 = vmul.f32 32.0, %v1303_v11  ;;  %vm813_vm9 = vweird.f32 %v1303_v11 }
 0x460   : > { %970 = vmatpush.bf16.msra.mxu1 %v1211_v55 }
 0x461   : > { %v810_v13 = vsub.f32 1.0, %v809_v12 }
 0x463   : > { %v811_v14 = vmul.f32 %v1303_v11, %v810_v13 }
 0x464   : > { %971 = vmatpush.bf16.msra.mxu1 %v1210_v59 }
 0x465   : > { %v812_v15 = vadd.f32 %v1303_v11, %v811_v14 }
 0x467   : > { %v814_v16 = vsel %vm813_vm9, %v1303_v11, %v812_v15 }
 0x4cd   : > { %v807_v17 = vpop.xlane.xlu0 %806 }
 0x4ce   : > { %v815_v18 = vmul.f32 %v814_v16, %v807_v17 }
 0x4d0   : > { %v816_v19 = vsub.f32 %v1614_v8, %v815_v18 }
 0x4d2   : > { %v817_v20 = vmul.f32 %v816_v19, %v816_v19 }
 0x4d4   : > { %v818_v21 = vsel %vm641_vm6, %v817_v20, 0.0 }
 0x4d5   : > { %819 = vadd.xlane.f32.xlu0 %v818_v21 }
 0x548   : > { %v820_v24 = vpop.xlane.xlu0 %819 }
 0x549   : > { %v821_v25 = vmul.f32 %v820_v24, %v814_v16 }
 0x54b   : > { %v822_v26 = vadd.f32 1e-05, %v821_v25  ;;  %v1301_v25 = vld [vmem:[%s1752_s26] ss:$0 sm:$0xff] }
 0x54d   : > { %1304 = vrsqrt.f32 %v822_v26  ;;  %vm829_vm11 = vweird.f32 %v822_v26 }
 0x553   : > { %v1305_v27 = vpop.eup %1304 }
 0x554   : > { %v824_v28 = vmul.f32 %v1305_v27, %v822_v26  ;;  %vm830_vm10 = vweird.f32 %v1305_v27 }
 0x555   : > { %vm831_vm12 = vmor %vm829_vm11, %vm830_vm10 }
 0x556   : > { %v825_v29 = vmul.f32 %v1305_v27, %v824_v28 }
 0x558   : > { %v826_v30 = vmul.f32 0.5, %v825_v29 }
 0x55a   : > { %v827_v31 = vsub.f32 1.5, %v826_v30 }
 0x55c   : > { %v828_v32 = vmul.f32 %v1305_v27, %v827_v31 }
 0x55e   : > { %v832_v34 = vsel %vm831_vm12, %v1305_v27, %v828_v32 }
 0x55f   : > { %v833_v35 = vmul.f32 %v832_v34, %v816_v19 }
 0x561   : > { %v837_v37 = vmul.f32 %v1298_v33, %v833_v35 }
 0x563   : > { %v841_v38 = vadd.f32 %v1299_v36, %v837_v37 }
 0x565   : > { %v842_v39 = vpack.c.bf16 %v841_v38, %v841_v38 }
 0x567   : > { %1176 = vmatmul.msk.bf16.vlgmr.msra.gmra.mxu0 %vm641_vm6, %v842_v39 }
 0x5e4   : > { %v875_v41 = vpop.f32.mrf.mxu0 }
 0x5e5   : > { %v876_v42 = vadd.f32 %v1300_v40, %v875_v41 }
 0x5e7   : > { %v880_v43 = vmul.f32 0.70710677, %v876_v42  ;;  %v879_v21 = vmul.f32 0.5, %v876_v42 }
 0x5e9   : > { %v881_v44 = vmul.f32 %v880_v43, %v880_v43 }
 0x5eb   : > { %v882_v45 = vmin.f32 %v881_v44, 16.0 }
 0x5ec   : > { %v877_v46 = vpop.f32.mrf.mxu0 }
 0x5ed   : > { %v883_v48 = vmul.f32 2.1237322e-06, %v882_v45  ;;  %v894_v49 = vmul.f32 3.8918573e-05, %v882_v45 }
 0x5ef   : > { %v884_v50 = vadd.f32 0.00028619796, %v883_v48  ;;  %v895_v51 = vadd.f32 0.001143296, %v894_v49 }
 0x5f1   : > { %v885_v53 = vmul.f32 %v884_v50, %v882_v45  ;;  %v896_v54 = vmul.f32 %v895_v51, %v882_v45 }
 0x5f3   : > { %v897_v56 = vadd.f32 0.014752088, %v896_v54  ;;  %v886_v57 = vadd.f32 0.0036580483, %v885_v53 }
 0x5f5   : > { %v898_v58 = vmul.f32 %v897_v56, %v882_v45  ;;  %v887_v61 = vmul.f32 %v886_v57, %v882_v45 }
 0x5f7   : > { %v899_v60 = vadd.f32 0.112945676, %v898_v58  ;;  %v888_v0 = vadd.f32 0.05243302, %v887_v61 }
 0x5f9   : > { %v900_v62 = vmul.f32 %v899_v60, %v882_v45  ;;  %v889_v3 = vmul.f32 %v888_v0, %v882_v45 }
 0x5fb   : > { %v901_v63 = vadd.f32 0.4994258, %v900_v62  ;;  %v890_v4 = vadd.f32 0.18741608, %v889_v3 }
 0x5fd   : > { %v902_v1 = vmul.f32 %v901_v63, %v882_v45  ;;  %v891_v6 = vmul.f32 %v890_v4, %v882_v45 }
 0x5ff   : > { %v903_v2 = vadd.f32 1.0, %v902_v1  ;;  %v892_v11 = vadd.f32 1.1283791, %v891_v6 }
 0x601   : > { %1306 = vrcp.f32 %v903_v2  ;;  %v915_v10 = vand.u32 2147483648, %v903_v2  ;;  %v913_v13 = vand.u32 2147483647, %v903_v2  ;;  %vm909_vm14 = vweird.f32 %v903_v2 }
 0x602   : > { %v893_v16 = vmul.f32 %v892_v11, %v880_v43 }
 0x603   : > { %v916_v15 = vor.u32 1.1754944e-38, %v915_v10  ;;  %vm914_vm0 = vcmp.eq.f32.partialorder %v913_v13, 8.507059e+37 }
 0x607   : > { %v1307_v5 = vpop.eup %1306 }
 0x608   : > { %v905_v7 = vmul.f32 %v1307_v5, %v903_v2  ;;  %vm910_vm13 = vweird.f32 %v1307_v5 }
 0x609   : > { %vm911_vm15 = vmor %vm909_vm14, %vm910_vm13 }
 0x60a   : > { %v906_v9 = vsub.f32 1.0, %v905_v7 }
 0x60c   : > { %v907_v12 = vmul.f32 %v1307_v5, %v906_v9 }
 0x60e   : > { %v908_v14 = vadd.f32 %v1307_v5, %v907_v12 }
 0x610   : > { %v912_v17 = vsel %vm911_vm15, %v1307_v5, %v908_v14 }
 0x611   : > { %v917_v18 = vsel %vm914_vm0, %v916_v15, %v912_v17 }
 0x612   : > { %v918_v19 = vmul.f32 %v917_v18, %v893_v16 }
 0x614   : > { %v1177_v20 = vclamps-f32 %v918_v19, 1.0 }
 0x616   : > { %v921_v22 = vadd.f32 1.0, %v1177_v20 }
 0x618   : > { %v922_v23 = vmul.f32 %v921_v22, %v879_v21 }
 0x61a   : > { %v923_v24 = vpack.c.bf16 %v922_v23, %v922_v23 }
 0x61c   : > { %1194 = vmatmul.msk.bf16.vlgmr.msra.gmra.mxu1 %vm960_vm1, %v923_v24 }
 0x699   : > { %v973_v26 = vpop.f32.mrf.mxu1 }
 0x69a   : > { %v974_v27 = vadd.f32 %v1301_v25, %v973_v26 }
 0x69c   : > { %v977_v28 = vadd.f32 %v974_v27, %v1614_v8 }
 0x69e   : > { %978 = vst.msk [vmem:[%s537_s28] sm:$0xff] %vm641_vm6, %v977_v28 }
 0x6a1   : > { %v975_v29 = vpop.f32.mrf.mxu1 }
 0x6a2 PF: > { %s1753_s21 = sld [smem:[#allocation10_spill]]  ;;  %s993_s15 = sshll.u32 %s537_s28, 4  ;;  %s994_s15 = int_to_ptr.vmem [resolvable:$true] %s993_s15 }
 0x6a3   : > { %s1754_s22 = sld [smem:[#allocation8_spill]] }
 0x6a4   : > { %s1756_s29 = sld [smem:[#allocation22_spill]] }
 0x6a8   : > { %s1196_s27 = sshll.u32 %s1753_s21, 3 }
 0x6a9   : > { %s1758_s17 = sand.u32 1, %s1754_s22  }
 0x6aa   : > { %s1757_s13 = smov %s1756_s29  ;;  %s991_s30 = scalar_lea.hbm %s1756_s29, %s1196_s27 }
 0x6ab   : > { %s995_s16 = sshll.u32 %s991_s30, 4  ;;  %s980_s20 = scalar_lea.sflag [#allocation5], %s1758_s17  ;;  %s996_s16 = int_to_ptr.hbm [resolvable:$true] %s995_s16 }
 0x6ac   : > { %s1322_s24 = sshra.s32 %s996_s16, 4  ;;  %s1328_s0 = scalar_lea.hbm %s1757_s13, 16  ;;  %s1323_s24 = int_to_ptr.hbm [resolvable:$true] %s1322_s24 }
 0x6ad   : > { %s1324_s25 = scalar_lea.hbm %s1323_s24, 8  ;;  %p1329_p6 = scmp.lt.s32.totalorder %s1323_s24, %s1757_s13 }
 0x6ae   : > { %p1325_p2 = scmp.ne.s32.totalorder %s1323_s24, %s1324_s25  ;;  %p1330_p7 = scmp.lt.s32.totalorder %s1328_s0, %s1324_s25 }
 0x6b0   : > { %p1326_p4 = pnand %p1325_p2, %p1530_p3  ;;  %p1331_p8 = por %p1330_p7, %p1329_p6 }
 0x6b2   : > { %p1327_p5 = pneg %p1326_p4 }
 0x6b4   : > { %p1332_p10 = pnand %p1331_p8, %p1327_p5 }
 0x6b6   : > { %1335 = shalt.err (!%p1332_p10)
}
 0x6b7   : > { %1214 = dma.vmem_to_hbm [thread:$0]  (%p1530_p3), %s994_s15, 128, %s996_s16, %s980_s20  }
 0x6b8 PF: > { %s1759_s23 = sld [smem:[#allocation13_spill]] }
 0x6b9   : > { %s1760_s28 = sld [smem:[#allocation7_spill]] }
 0x6be   : > { %p1220_p11 = scmp.ge.s32.totalorder %s1759_s23, 2 }
 0x6bf   : > { %s1007_s14 = sand.u32 1, %s1760_s28  }
 0x6c0   : > { %p1217_p12 = pnand %p1220_p11, %p1540_p9  ;;  %s1008_s29 = scalar_lea.sflag [#allocation5], %s1007_s14 }
 0x6c2   : > { %p1218_p13 = pneg %p1217_p12 }
 0x6c4   : > { %1369 = dma.done.wait (%p1218_p13), %s1008_s29, 128  }
 0x6c5   : > { %1371 = vsyncadd (%p1218_p13), %s1008_s29, 4294967168  ;;  %s27_s20 = sadd.s32 1, %s1759_s23   ;;  %s1762_s29 = sld [smem:[#allocation8_spill]] }
 0x6c6   : > { %p24_p0 = scmp.ge.s32.totalorder %s27_s20, 10   ;;  %s1763_s30 = sld [smem:[#allocation9_spill]] }
 0x6c7   : > { %s1764_s15 = sld [smem:[#allocation18_spill]] }
 0x6c8   : > { %s1765_s16 = sld [smem:[#allocation11_spill]]  ;;  %26 = sbr.rel (!%p24_p0) target bundleno = 10 (0xa), region = 133 }
 0x6c9   : > { %s1766_s17 = sld [smem:[#allocation12_spill]] }
 0x6ca   : > { %s1767_s18 = sld [smem:[#allocation14_spill]] }
 0x6cb   : > { %s1768_s19 = sld [smem:[#allocation16_spill]] }
 0x6cd   :  { %1014 = vsyncpa [#allocation5], 1 }
 0x6ce   :  { %1016 = vsyncpa [#allocation5 + $0x1], 1 }

</bundles_post_ra>
